<compile_context>
chip_gen: v7x
topology: tpu7x:2x2x1
jax: 0.10.0
libtpu: 0.0.40
codegen_flags: <defaults>
</compile_context>

<pallas_src>
import functools
import math

import numpy as np
import jax
import jax.numpy as jnp
from jax.experimental import pallas as pl
from jax.experimental.pallas import tpu as pltpu


# ----------------------------------------------------------------------------
# helpers
# ----------------------------------------------------------------------------
def _round_up(x, m):
    return ((x + m - 1) // m) * m


def _pick_tm(M):
    if M >= 256 and M % 256 == 0:
        return 256
    if M >= 128:
        return 128
    return _round_up(max(M, 1), 16)          # bf16 sublane packing


def _pick_tn(N):
    if N >= 256 and N % 256 == 0:
        return 256
    return 128


def _pick_tk(K):
    if K >= 512 and K % 512 == 0:
        return 512
    if K >= 256 and K % 256 == 0:
        return 256
    return 128


def _maybe_pad2(x, r, c):
    R, C = x.shape
    if R == r and C == c:
        return x
    return jnp.pad(x, ((0, r - R), (0, c - C)))


# ----------------------------------------------------------------------------
# Pallas kernel 1: o = act(a @ b + bias)   a:(M,K) bf16, b:(K,N) bf16
# ----------------------------------------------------------------------------
def _mm_kernel(a_ref, b_ref, bias_ref, o_ref, acc_ref, *, act):
    @pl.when(pl.program_id(2) == 0)
    def _init():
        acc_ref[...] = jnp.zeros_like(acc_ref)

    acc_ref[...] += jnp.dot(a_ref[...], b_ref[...],
                            preferred_element_type=jnp.float32)

    @pl.when(pl.program_id(2) == pl.num_programs(2) - 1)
    def _fin():
        r = acc_ref[...] + bias_ref[...]
        if act == 'relu':
            r = jnp.maximum(r, 0.0)
        elif act == 'sigmoid':
            r = jax.nn.sigmoid(r)
        o_ref[...] = r.astype(o_ref.dtype)


@functools.lru_cache(maxsize=None)
def _get_mm_call(Mp, Kp, Np, tm, tn, tk, act):
    kernel = functools.partial(_mm_kernel, act=act)
    return pl.pallas_call(
        kernel,
        out_shape=jax.ShapeDtypeStruct((Mp, Np), jnp.float32),
        grid_spec=pltpu.PrefetchScalarGridSpec(
            num_scalar_prefetch=0,
            grid=(Mp // tm, Np // tn, Kp // tk),
            in_specs=[
                pl.BlockSpec((tm, tk), lambda i, j, k: (i, k)),
                pl.BlockSpec((tk, tn), lambda i, j, k: (k, j)),
                pl.BlockSpec((1, tn), lambda i, j, k: (0, j)),
            ],
            out_specs=pl.BlockSpec((tm, tn), lambda i, j, k: (i, j)),
            scratch_shapes=[pltpu.VMEM((tm, tn), jnp.float32)],
        ),
        compiler_params=pltpu.CompilerParams(
            dimension_semantics=("parallel", "parallel", "arbitrary")),
    )


def pallas_matmul(a, b, bias=None, act='none'):
    """act(a @ b + bias): a (M,K), b (K,N) -> (M,N) float32, MXU in bf16."""
    M, K = a.shape
    K2, N = b.shape
    assert K == K2
    a = a.astype(jnp.bfloat16)
    b = b.astype(jnp.bfloat16)
    tm, tn, tk = _pick_tm(M), _pick_tn(N), _pick_tk(K)
    Mp, Kp, Np = _round_up(M, tm), _round_up(K, tk), _round_up(N, tn)
    a_p = _maybe_pad2(a, Mp, Kp)
    b_p = _maybe_pad2(b, Kp, Np)
    if bias is None:
        bias_p = jnp.zeros((1, Np), jnp.float32)
    else:
        bias_p = _maybe_pad2(bias.astype(jnp.float32).reshape(1, N), 1, Np)
    out = _get_mm_call(Mp, Kp, Np, tm, tn, tk, act)(a_p, b_p, bias_p)
    return out[:M, :N]


# ----------------------------------------------------------------------------
# Pallas kernel 2: o = act(a @ b.T + bias)   a:(M,K) weights, b:(N,K) im2col.
# Used for the tiny-Cout deconvs so that the large spatial axis is the
# lane-dense N axis of the output (M = Cout padded only to 16).
# ----------------------------------------------------------------------------
def _mm_nt_kernel(a_ref, b_ref, bias_ref, o_ref, acc_ref, *, act):
    @pl.when(pl.program_id(2) == 0)
    def _init():
        acc_ref[...] = jnp.zeros_like(acc_ref)

    acc_ref[...] += jax.lax.dot_general(
        a_ref[...], b_ref[...],
        dimension_numbers=(((1,), (1,)), ((), ())),
        preferred_element_type=jnp.float32)

    @pl.when(pl.program_id(2) == pl.num_programs(2) - 1)
    def _fin():
        r = acc_ref[...] + bias_ref[...]
        if act == 'relu':
            r = jnp.maximum(r, 0.0)
        elif act == 'sigmoid':
            r = jax.nn.sigmoid(r)
        o_ref[...] = r.astype(o_ref.dtype)


@functools.lru_cache(maxsize=None)
def _get_mm_nt_call(Mp, Kp, Np, tm, tn, tk, act):
    kernel = functools.partial(_mm_nt_kernel, act=act)
    return pl.pallas_call(
        kernel,
        out_shape=jax.ShapeDtypeStruct((Mp, Np), jnp.float32),
        grid_spec=pltpu.PrefetchScalarGridSpec(
            num_scalar_prefetch=0,
            grid=(Mp // tm, Np // tn, Kp // tk),
            in_specs=[
                pl.BlockSpec((tm, tk), lambda i, j, k: (i, k)),
                pl.BlockSpec((tn, tk), lambda i, j, k: (j, k)),
                pl.BlockSpec((tm, 1), lambda i, j, k: (i, 0)),
            ],
            out_specs=pl.BlockSpec((tm, tn), lambda i, j, k: (i, j)),
            scratch_shapes=[pltpu.VMEM((tm, tn), jnp.float32)],
        ),
        compiler_params=pltpu.CompilerParams(
            dimension_semantics=("parallel", "parallel", "arbitrary")),
    )


def pallas_matmul_nt(a, b, bias=None, act='none'):
    """act(a @ b.T + bias[:,None]): a (M,K), b (N,K) -> (M,N) float32."""
    M, K = a.shape
    N, K2 = b.shape
    assert K == K2
    a = a.astype(jnp.bfloat16)
    b = b.astype(jnp.bfloat16)
    tm = _pick_tm(M)
    tn = _pick_tn(N)
    tk = _pick_tk(K)
    Mp, Kp, Np = _round_up(M, tm), _round_up(K, tk), _round_up(N, tn)
    a_p = _maybe_pad2(a, Mp, Kp)
    b_p = _maybe_pad2(b, Np, Kp)
    if bias is None:
        bias_p = jnp.zeros((Mp, 1), jnp.float32)
    else:
        bias_p = _maybe_pad2(bias.astype(jnp.float32).reshape(M, 1), Mp, 1)
    out = _get_mm_nt_call(Mp, Kp, Np, tm, tn, tk, act)(a_p, b_p, bias_p)
    return out[:M, :N]


# ----------------------------------------------------------------------------
# Pallas kernel 3: fused  max over rows of (a @ b)  ->  (1, N)
# (fine-template similarity; the HWxHW score matrix never reaches HBM)
# ----------------------------------------------------------------------------
def _mm_max_kernel(a_ref, b_ref, o_ref, acc_ref, *, m_total, tm):
    i = pl.program_id(1)

    @pl.when(i == 0)
    def _init():
        acc_ref[...] = jnp.full(acc_ref.shape, -jnp.inf, jnp.float32)

    s = jnp.dot(a_ref[...], b_ref[...], preferred_element_type=jnp.float32)
    rows = jax.lax.broadcasted_iota(jnp.int32, s.shape, 0) + i * tm
    s = jnp.where(rows < m_total, s, -jnp.inf)          # mask padded template rows
    acc_ref[...] = jnp.maximum(acc_ref[...], jnp.max(s, axis=0, keepdims=True))

    @pl.when(i == pl.num_programs(1) - 1)
    def _fin():
        o_ref[...] = acc_ref[...]


@functools.lru_cache(maxsize=None)
def _get_mm_max_call(Mp, Kp, Np, tm, tn, m_total):
    kernel = functools.partial(_mm_max_kernel, m_total=m_total, tm=tm)
    return pl.pallas_call(
        kernel,
        out_shape=jax.ShapeDtypeStruct((1, Np), jnp.float32),
        grid_spec=pltpu.PrefetchScalarGridSpec(
            num_scalar_prefetch=0,
            grid=(Np // tn, Mp // tm),       # reduction (template rows) last
            in_specs=[
                pl.BlockSpec((tm, Kp), lambda j, i: (i, 0)),
                pl.BlockSpec((Kp, tn), lambda j, i: (0, j)),
            ],
            out_specs=pl.BlockSpec((1, tn), lambda j, i: (0, j)),
            scratch_shapes=[pltpu.VMEM((1, tn), jnp.float32)],
        ),
        compiler_params=pltpu.CompilerParams(
            dimension_semantics=("parallel", "arbitrary")),
    )


def pallas_matmul_max(a, b):
    """max over rows of (a @ b): a (M,K) templates, b (K,N) keys -> (N,) f32."""
    M, K = a.shape
    K2, N = b.shape
    assert K == K2
    a = a.astype(jnp.bfloat16)
    b = b.astype(jnp.bfloat16)
    tm = 128 if M >= 128 else _round_up(max(M, 1), 16)
    tn = _pick_tn(N)
    Kp = _round_up(K, 128)                   # K (=512) kept as a single block
    Mp, Np = _round_up(M, tm), _round_up(N, tn)
    a_p = _maybe_pad2(a, Mp, Kp)
    b_p = _maybe_pad2(b, Kp, Np)
    out = _get_mm_max_call(Mp, Kp, Np, tm, tn, M)(a_p, b_p)
    return out[0, :N]


# ----------------------------------------------------------------------------
# NHWC conv / transposed conv built on the Pallas matmuls
# ----------------------------------------------------------------------------
def _im2col_nhwc(x, kh, kw, stride, pad):
    B, H, W, C = x.shape
    if pad > 0:
        x = jnp.pad(x, ((0, 0), (pad, pad), (pad, pad), (0, 0)))
    Hp, Wp = x.shape[1], x.shape[2]
    OH = (Hp - kh) // stride + 1
    OW = (Wp - kw) // stride + 1
    cols = [x[:, i:i + stride * OH:stride, j:j + stride * OW:stride, :]
            for i in range(kh) for j in range(kw)]
    col = jnp.concatenate(cols, axis=-1)                 # (B, OH, OW, kh*kw*C)
    return col, OH, OW


def conv2d_nhwc(x, w, b, stride=1, pad=0, act='none'):
    """x: (B,H,W,Cin); w: (Cout,Cin,kh,kw) (PyTorch layout) -> (B,OH,OW,Cout)."""
    Cout, Cin, kh, kw = w.shape
    B = x.shape[0]
    x = x.astype(jnp.bfloat16)
    w = w.astype(jnp.bfloat16)
    if kh == 1 and kw == 1 and stride == 1 and pad == 0:
        OH, OW = x.shape[1], x.shape[2]
        a = x.reshape(B * OH * OW, Cin)
        wm = w.reshape(Cout, Cin).T
    else:
        col, OH, OW = _im2col_nhwc(x, kh, kw, stride, pad)
        a = col.reshape(B * OH * OW, kh * kw * Cin)
        wm = w.transpose(2, 3, 1, 0).reshape(kh * kw * Cin, Cout)
    out = pallas_matmul(a, wm, bias=b, act=act)          # (B*OH*OW, Cout)
    return out.reshape(B, OH, OW, Cout)


def conv_transpose2d_nhwc(x, w, b, stride, pad, act='none'):
    """x: (B,H,W,Cin); w: (Cin,Cout,kh,kw) (PyTorch ConvTranspose2d layout).

    Direct sub-pixel formulation: one small dense matmul per output phase on
    the undilated input; no zero-stuffed intermediate and zero wasted MXU taps.
    """
    Cin, Cout, kh, kw = w.shape
    B, H, W, _ = x.shape
    s = stride
    assert kh - 2 * pad == s and kw - 2 * pad == s, "unsupported deconv geometry"
    x = x.astype(jnp.bfloat16)
    wf = w[:, :, ::-1, ::-1].astype(jnp.bfloat16)        # spatially flipped

    def phase_sched(v, k):
        c = (k - 1 - pad - v) % s
        taps = list(range(c, k, s))
        off = (v + c - (k - 1) + pad) // s
        return taps, off

    scheds_y = [phase_sched(v, kh) for v in range(s)]
    scheds_x = [phase_sched(v, kw) for v in range(s)]
    pt = max(max(0, -off) for _, off in scheds_y)
    pb = max(max(0, len(t) - 1 + off) for t, off in scheds_y)
    pleft = max(max(0, -off) for _, off in scheds_x)
    pr = max(max(0, len(t) - 1 + off) for t, off in scheds_x)
    xp = jnp.pad(x, ((0, 0), (pt, pb), (pleft, pr), (0, 0)))

    phases = []
    for vy in range(s):
        taps_y, offy = scheds_y[vy]
        row = []
        for vx in range(s):
            taps_x, offx = scheds_x[vx]
            cols = [xp[:, offy + m + pt: offy + m + pt + H,
                       offx + n + pleft: offx + n + pleft + W, :]
                    for m in range(len(taps_y)) for n in range(len(taps_x))]
            col = jnp.concatenate(cols, axis=-1)         # (B,H,W, ny*nx*Cin)
            wp = jnp.stack([wf[:, :, ty, tx] for ty in taps_y for tx in taps_x],
                           axis=0)                        # (ny*nx, Cin, Cout)
            wp = wp.reshape(-1, Cout).T                   # (Cout, ny*nx*Cin)
            ph = pallas_matmul_nt(wp, col.reshape(B * H * W, -1),
                                  bias=b, act=act)        # (Cout, B*H*W)
            row.append(ph.reshape(Cout, B, H, W))
        phases.append(jnp.stack(row, axis=0))             # (s, Cout, B, H, W)
    ph_all = jnp.stack(phases, axis=0)                    # (sy, sx, Cout, B, H, W)
    out = ph_all.transpose(3, 4, 0, 5, 1, 2).reshape(B, H * s, W * s, Cout)
    return out


def avg_pool2d_nhwc(x, k):
    B, H, W, C = x.shape
    return x.reshape(B, H // k, k, W // k, k, C).mean(axis=(2, 4))


# ----------------------------------------------------------------------------
# Parameter init (deterministic; kaiming-uniform style, biases 0)
# ----------------------------------------------------------------------------
def _kuniform(key, shape, fan_in):
    bound = math.sqrt(6.0 / fan_in)
    return jax.random.uniform(key, shape, jnp.float32, -bound, bound)


def conv_params(key, cout, cin, kh, kw):
    return {'w': _kuniform(key, (cout, cin, kh, kw), cin * kh * kw),
            'b': jnp.zeros((cout,), jnp.float32)}


def deconv_params(key, cin, cout, kh, kw):
    return {'w': _kuniform(key, (cin, cout, kh, kw), cout * kh * kw),
            'b': jnp.zeros((cout,), jnp.float32)}


def cbam_params(key, c):
    k = jax.random.split(key, 5)
    return {'conv1': conv_params(k[0], c, c, 3, 3),
            'c2a': conv_params(k[1], c, c, 1, 1),
            'c2b': conv_params(k[2], c, c, 1, 1),
            'c3a': conv_params(k[3], 16, 2, 3, 3),
            'c3b': conv_params(k[4], 1, 16, 3, 3)}


def decoder_params(key):
    k = jax.random.split(key, 12)
    return {'conv1': conv_params(k[0], 256, 1024, 1, 1),
            'blend1': conv_params(k[1], 256, 268, 3, 3),
            'cbam1': cbam_params(k[2], 256),
            'deconv1': deconv_params(k[3], 256, 2, 4, 4),
            'conv2': conv_params(k[4], 256, 512, 1, 1),
            'blend2': conv_params(k[5], 256, 258, 3, 3),
            'cbam2': cbam_params(k[6], 256),
            'deconv2': deconv_params(k[7], 256, 2, 4, 4),
            'conv3': conv_params(k[8], 256, 256, 1, 1),
            'blend3': conv_params(k[9], 256, 258, 3, 3),
            'cbam3': cbam_params(k[10], 256),
            'predictor': deconv_params(k[11], 256, 2, 6, 6)}


def init_params(key):
    k = jax.random.split(key, 8)
    return {
        'enc': {
            'e4': conv_params(k[0], 256, 3, 4, 4),
            'e8': conv_params(k[1], 512, 256, 2, 2),
            'e16': conv_params(k[2], 1024, 512, 2, 2),
            'mean': jnp.array([0.485, 0.456, 0.406], jnp.float32).reshape(1, 1, 1, 3),
            'std': jnp.array([0.229, 0.224, 0.225], jnp.float32).reshape(1, 1, 1, 3),
        },
        'matcher': {
            'conv': conv_params(k[3], 512, 1024, 1, 1),
            'short': jnp.array([1.0, 1.0], jnp.float32),
            'long': jnp.array([-1.0, -1.0], jnp.float32),
        },
        'decoder': decoder_params(k[4]),
        'dsf': {
            'w1': _kuniform(k[5], (4, 1), 1), 'b1': jnp.zeros((4,), jnp.float32),
            'w2': _kuniform(k[6], (1, 4), 4), 'b2': jnp.zeros((1,), jnp.float32),
        },
    }


# ----------------------------------------------------------------------------
# Sub-modules (NHWC internally; NCHW only at public boundaries)
# ----------------------------------------------------------------------------
def encoder_forward(p, x_nchw):
    # TODO(synk): stand-in for the pretrained DenseNet-121 feature pyramid
    # (identical strides / channel counts: 256@/4, 512@/8, 1024@/16).
    x = x_nchw.transpose(0, 2, 3, 1)                      # NHWC once, at boundary
    x = (x - p['mean']) / p['std']
    s4 = conv2d_nhwc(x, p['e4']['w'], p['e4']['b'], stride=4, pad=0, act='relu')
    s8 = conv2d_nhwc(s4, p['e8']['w'], p['e8']['b'], stride=2, pad=0, act='relu')
    s16 = conv2d_nhwc(s8, p['e16']['w'], p['e16']['b'], stride=2, pad=0, act='relu')
    return {'s16': s16, 's8': s8, 's4': s4}


def dsf_forward(p, dist):
    # 4-element MLP: plain jnp (a Pallas launch here is 100% overhead).
    x = dist.reshape(-1, 1).astype(jnp.float32)
    h = jax.nn.relu(x @ p['w1'].T + p['b1'])
    return jax.nn.sigmoid(h @ p['w2'].T + p['b2'])


def matcher_get_norm_key(p, feat_s16):
    key = conv2d_nhwc(feat_s16, p['conv']['w'], p['conv']['b'], 1, 0)  # (B,h,w,512)
    nrm = jnp.sqrt(jnp.sum(key * key, axis=-1, keepdims=True))
    key = key / nrm
    B, h, w, C = key.shape
    return key.reshape(B, h * w, C), (h, w)


def build_fine_template(norm_key_flat, init_seg_16):
    B, HW, C = norm_key_flat.shape
    bg = init_seg_16[..., 0].reshape(B, HW, 1)
    fg = init_seg_16[..., 1].reshape(B, HW, 1)
    return [norm_key_flat * bg, norm_key_flat * fg]


def build_coarse_template(fine_key):
    bg = jnp.clip(fine_key[0].sum(1, keepdims=True), 1e-7, None)
    fg = jnp.clip(fine_key[1].sum(1, keepdims=True), 1e-7, None)
    bg = bg / jnp.linalg.norm(bg, axis=2, keepdims=True)
    fg = fg / jnp.linalg.norm(fg, axis=2, keepdims=True)
    return [bg, fg]


def get_init_state(norm_key_flat, init_seg_16):
    state = {}
    state['global'] = build_fine_template(norm_key_flat, init_seg_16)
    state['local'] = list(state['global'])
    state['overall'] = build_coarse_template(state['global'])
    state['short-term'] = list(state['overall'])
    state['long-term'] = list(state['overall'])
    state['prev_seg_16'] = init_seg_16
    state['seg_sum'] = jnp.sum(init_seg_16, axis=(1, 2))[:, :, None]
    return state


def update_state(norm_key_flat, update_seg_16, state, short, long_):
    B, HW, C = norm_key_flat.shape
    fkbg = norm_key_flat * update_seg_16[..., 0].reshape(B, HW, 1)
    fkfg = norm_key_flat * update_seg_16[..., 1].reshape(B, HW, 1)
    state['local'] = [fkbg, fkfg]
    state['prev_seg_16'] = update_seg_16
    seg_sum = jnp.sum(update_seg_16, axis=(1, 2))[:, :, None]
    state['seg_sum'] = state['seg_sum'] + seg_sum
    dynamic_inertia = 1 - seg_sum / state['seg_sum']
    ckbg = jnp.clip(fkbg.sum(1, keepdims=True), 1e-7, None)
    ckfg = jnp.clip(fkfg.sum(1, keepdims=True), 1e-7, None)
    ckbg = ckbg / jnp.linalg.norm(ckbg, axis=2, keepdims=True)
    ckfg = ckfg / jnp.linalg.norm(ckfg, axis=2, keepdims=True)

    def blend(in_bg, in_fg, prev):
        nbg = in_bg * prev[0] + (1 - in_bg) * ckbg
        nfg = in_fg * prev[1] + (1 - in_fg) * ckfg
        nbg = nbg / jnp.linalg.norm(nbg, axis=2, keepdims=True)
        nfg = nfg / jnp.linalg.norm(nfg, axis=2, keepdims=True)
        return [nbg, nfg]

    state['overall'] = blend(dynamic_inertia[:, 0:1], dynamic_inertia[:, 1:2],
                             state['overall'])
    si = 1 / (1 + jnp.exp(short))
    state['short-term'] = blend(si[0], si[1], state['short-term'])
    li = 1 / (1 + jnp.exp(long_))
    state['long-term'] = blend(li[0], li[1], state['long-term'])
    return state


def matcher_forward(norm_key_flat, state, sds_flat):
    # norm_key_flat: (B, HW, C);  sds_flat: (HW,) (sigmoid output, >= 0)
    B, HW, C = norm_key_flat.shape
    sims = []
    for bi in range(B):
        nk_t = norm_key_flat[bi].T                        # (C, HW)
        # fine similarity: fused matmul + max-over-template-rows
        g_bg = pallas_matmul_max(state['global'][0][bi], nk_t)
        g_fg = pallas_matmul_max(state['global'][1][bi], nk_t)
        # sds >= 0 and constant over the reduced axis => scale after the max.
        l_bg = pallas_matmul_max(state['local'][0][bi], nk_t) * sds_flat
        l_fg = pallas_matmul_max(state['local'][1][bi], nk_t) * sds_flat
        # coarse similarity: 6 single-row matmuls fused into one call.
        coarse = jnp.concatenate(
            [state['overall'][0][bi], state['overall'][1][bi],
             state['short-term'][0][bi], state['short-term'][1][bi],
             state['long-term'][0][bi], state['long-term'][1][bi]], axis=0)  # (6, C)
        cs = pallas_matmul(coarse, nk_t)                  # (6, HW)
        sims.append(jnp.stack([g_bg, g_fg, l_bg, l_fg,
                               cs[0], cs[1], cs[2], cs[3], cs[4], cs[5]],
                              axis=-1))                   # (HW, 10)
    return jnp.stack(sims, axis=0)                        # (B, HW, 10)


def cbam_forward(p, x):
    x = conv2d_nhwc(x, p['conv1']['w'], p['conv1']['b'], 1, 1)
    ap = jnp.mean(x, axis=(1, 2), keepdims=True)
    mp = jnp.max(x, axis=(1, 2), keepdims=True)

    def branch(z):
        z = conv2d_nhwc(z, p['c2a']['w'], p['c2a']['b'], 1, 0, act='relu')
        return conv2d_nhwc(z, p['c2b']['w'], p['c2b']['b'], 1, 0)

    c = jax.nn.sigmoid(branch(ap) + branch(mp))
    x = x * c
    sm = jnp.concatenate([jnp.mean(x, axis=-1, keepdims=True),
                          jnp.max(x, axis=-1, keepdims=True)], axis=-1)
    s = conv2d_nhwc(sm, p['c3a']['w'], p['c3a']['b'], 1, 1, act='relu')
    s = jax.nn.sigmoid(conv2d_nhwc(s, p['c3b']['w'], p['c3b']['b'], 1, 1))
    return x * s


def decoder_forward(p, feats, simscore, prev_seg_16):
    x = jnp.concatenate(
        [conv2d_nhwc(feats['s16'], p['conv1']['w'], p['conv1']['b'], 1, 0, act='relu'),
         simscore, prev_seg_16], axis=-1)
    x = conv2d_nhwc(x, p['blend1']['w'], p['blend1']['b'], 1, 1, act='relu')
    x = cbam_forward(p['cbam1'], x)
    s8 = conv_transpose2d_nhwc(x, p['deconv1']['w'], p['deconv1']['b'], 2, 1)
    x = jnp.concatenate(
        [conv2d_nhwc(feats['s8'], p['conv2']['w'], p['conv2']['b'], 1, 0, act='relu'),
         s8], axis=-1)
    x = conv2d_nhwc(x, p['blend2']['w'], p['blend2']['b'], 1, 1, act='relu')
    x = cbam_forward(p['cbam2'], x)
    s4 = conv_transpose2d_nhwc(x, p['deconv2']['w'], p['deconv2']['b'], 2, 1)
    x = jnp.concatenate(
        [conv2d_nhwc(feats['s4'], p['conv3']['w'], p['conv3']['b'], 1, 0, act='relu'),
         s4], axis=-1)
    x = conv2d_nhwc(x, p['blend3']['w'], p['blend3']['b'], 1, 1, act='relu')
    x = cbam_forward(p['cbam3'], x)
    return conv_transpose2d_nhwc(x, p['predictor']['w'], p['predictor']['b'], 4, 1)


# ----------------------------------------------------------------------------
# Padding helpers / aggregation
# ----------------------------------------------------------------------------
def get_required_padding(height, width, div):
    hp = (div - height % div) % div
    wp = (div - width % div) % div
    return [(wp + 1) // 2, wp // 2, (hp + 1) // 2, hp // 2]


def apply_padding_jax(x, masks, padding):
    pw = ((0, 0), (0, 0), (0, 0), (padding[2], padding[3]), (padding[0], padding[1]))
    x = jnp.pad(x, pw, mode='reflect')
    pm = ((0, 0), (0, 0), (padding[2], padding[3]), (padding[0], padding[1]))
    masks = [jnp.pad(m.astype(jnp.float32), pm, mode='reflect').astype(jnp.int32)
             if m is not None else None for m in masks]
    return x, masks


def unpad(t, padding):
    _, _, _, H, W = t.shape
    return t[:, :, :, padding[2]:H - padding[3], padding[0]:W - padding[1]]


def softmax_aggregate(predicted_seg, object_ids):
    # predicted_seg[k]: (B, H, W, 2) NHWC with [...,0]=bg, [...,1]=fg
    bg = jnp.min(jnp.stack([seg[..., 0] for seg in predicted_seg.values()], -1), -1)
    bg_seg = jnp.stack([1 - bg, bg], axis=-1)
    logits = {}
    for n, seg in [(-1, bg_seg)] + list(predicted_seg.items()):
        logits[n] = (jnp.clip(seg[..., 1:], 1e-7, 1 - 1e-7) /
                     jnp.clip(seg[..., 0:1], 1e-7, 1 - 1e-7))
    logits_sum = jnp.concatenate(list(logits.values()), -1).sum(-1, keepdims=True)
    agg_lst = [logits[n] / logits_sum for n in [-1] + object_ids]
    agg_inv = [1 - e for e in agg_lst]
    aggregated = jnp.concatenate(
        [e for pair in zip(agg_inv, agg_lst) for e in pair], axis=-1)
    wrong = jnp.argmax(aggregated[..., 1::2], axis=-1)[:, None].astype(jnp.int32)
    final_seg = jnp.zeros_like(wrong)
    for idx, obj in enumerate(object_ids):
        final_seg = jnp.where(wrong == idx + 1, obj, final_seg)
    agg_seg = {obj: aggregated[..., 2 * (idx + 1):2 * (idx + 2)]
               for idx, obj in enumerate(object_ids)}
    return final_seg, agg_seg


# ----------------------------------------------------------------------------
# TBD forward
# ----------------------------------------------------------------------------
def tbd_forward(params, x, given_masks, dist, val_frame_ids=None):
    B, L, _, H0, W0 = x.shape
    required_padding = get_required_padding(H0, W0, 16)
    if tuple(required_padding) != (0, 0, 0, 0):
        x, given_masks = apply_padding_jax(x, given_masks, required_padding)
    _, _, _, H0, W0 = x.shape
    video_frames = [x[:, i] for i in range(L)]            # NCHW at the boundary

    feats = encoder_forward(params['enc'], video_frames[0])
    norm_key, (h16, w16) = matcher_get_norm_key(params['matcher'], feats['s16'])

    init_mask = given_masks[0]                            # (B,1,H,W) int
    object_ids = [int(v) for v in np.unique(np.asarray(init_mask)) if v != 0]
    state = {}
    for k in object_ids:
        m = init_mask[:, 0]
        init_seg = jnp.stack([(m != k), (m == k)], axis=-1).astype(jnp.float32)
        state[k] = get_init_state(norm_key, avg_pool2d_nhwc(init_seg, 16))

    sds_flat = dsf_forward(params['dsf'], dist).reshape(-1)    # (h16*w16,)

    seg_lst = [given_masks[0]]
    for i in range(1, L):
        feats = encoder_forward(params['enc'], video_frames[i])
        norm_key, _ = matcher_get_norm_key(params['matcher'], feats['s16'])
        segscore = {}
        for k in object_ids:
            simscore = matcher_forward(norm_key, state[k], sds_flat)
            simscore = simscore.reshape(B, h16, w16, 10)
            segscore[k] = decoder_forward(params['decoder'], feats, simscore,
                                          state[k]['prev_seg_16'])
        predicted_seg = {k: jax.nn.softmax(segscore[k], axis=-1)
                         for k in object_ids}
        if given_masks[i] is not None:
            m = given_masks[i]
            new_ids = [int(v) for v in np.unique(np.asarray(m)) if v != 0]
            for nk_ in new_ids:
                mm = m[:, 0]
                init_seg = jnp.stack([(mm != nk_), (mm == nk_)],
                                     axis=-1).astype(jnp.float32)
                state[nk_] = get_init_state(norm_key, avg_pool2d_nhwc(init_seg, 16))
                predicted_seg[nk_] = init_seg
            object_ids = object_ids + new_ids
        output_seg, aggregated_seg = softmax_aggregate(predicted_seg, object_ids)
        update_seg_16 = {k: avg_pool2d_nhwc(aggregated_seg[k], 16)
                         for k in object_ids}
        if i < L - 1:
            for k in object_ids:
                state[k] = update_state(norm_key, update_seg_16[k], state[k],
                                        params['matcher']['short'],
                                        params['matcher']['long'])
        if given_masks[i] is not None:
            output_seg = jnp.where(given_masks[i] != 0, 0, output_seg)
            seg_lst.append(output_seg + given_masks[i])
        elif val_frame_ids is not None:
            adjusted_i = i + val_frame_ids[0]
            if adjusted_i in val_frame_ids:
                seg_lst.append(output_seg)
        else:
            seg_lst.append(output_seg)

    segs = jnp.stack(seg_lst, axis=1)
    segs = unpad(segs, required_padding)
    return {'segs': segs}


# ----------------------------------------------------------------------------
if __name__ == "__main__":
    key = jax.random.PRNGKey(0)
    B, L, H0, W0 = 1, 3, 32, 32

    x = jax.random.uniform(key, (B, L, 3, H0, W0), jnp.float32)

    mask0 = np.zeros((B, 1, H0, W0), np.int32)
    mask0[:, :, 8:20, 10:24] = 1
    given_masks = [jnp.asarray(mask0), None, None]

    # dist has (H0//16)*(W0//16) = 4 entries -> sds over the 2x2 s16 grid
    dist = jnp.array([0.1, 0.5, 1.0, 2.0], jnp.float32)

    params = init_params(jax.random.PRNGKey(42))

    out = tbd_forward(params, x, given_masks, dist, val_frame_ids=None)
    segs = jax.block_until_ready(out['segs'])
    assert segs.shape == (B, L, 1, H0, W0), segs.shape
    assert bool(jnp.all(jnp.isfinite(segs.astype(jnp.float32))))
    print("KERNEL_OK")
</pallas_src>

<mosaic_0001>
module attributes {stable_mosaic.version = 11 : i64} {
  func.func @_mm_kernel(%arg0: i32, %arg1: i32, %arg2: i32, %arg3: memref<64x128xbf16, #tpu.memory_space<vmem>>, %arg4: memref<128x256xbf16, #tpu.memory_space<vmem>>, %arg5: memref<1x256xf32, #tpu.memory_space<vmem>>, %arg6: memref<64x256xf32, #tpu.memory_space<vmem>>, %arg7: memref<64x256xf32, #tpu.memory_space<vmem>>) attributes {dimension_semantics = [#tpu.dimension_semantics<parallel>, #tpu.dimension_semantics<parallel>, #tpu.dimension_semantics<arbitrary>], iteration_bounds = array<i64: 1, 1, 1>, scalar_prefetch = 0 : i64, scratch_operands = 1 : i64, tpu.core_type = #tpu.core_type<tc>, window_params = [{transform_indices = @transform_0, window_bounds = array<i64: 64, 128>}, {transform_indices = @transform_1, window_bounds = array<i64: 128, 256>}, {transform_indices = @transform_2, window_bounds = array<i64: 1, 256>}, {transform_indices = @transform_3, window_bounds = array<i64: 64, 256>}]} {
    %c0_i32 = arith.constant 0 : i32
    %0 = arith.cmpi eq, %arg2, %c0_i32 : i32
    %1 = arith.extui %0 : i1 to i32
    %c0_i32_0 = arith.constant 0 : i32
    %2 = arith.cmpi ne, %1, %c0_i32_0 : i32
    scf.if %2 {
      %cst_10 = arith.constant 0.000000e+00 : f32
      %12 = vector.broadcast %cst_10 : f32 to vector<64x256xf32>
      %c0_11 = arith.constant 0 : index
      %c0_12 = arith.constant 0 : index
      %13 = vector.load %arg7[%c0_11, %c0_12] : memref<64x256xf32, #tpu.memory_space<vmem>>, vector<64x256xf32>
      tpu.vector_store %arg7[%c0_11, %c0_12], %12 {strides = array<i32>} : memref<64x256xf32, #tpu.memory_space<vmem>>, vector<64x256xf32>,
    } else {
    }
    %c0 = arith.constant 0 : index
    %c0_1 = arith.constant 0 : index
    %3 = vector.load %arg7[%c0, %c0_1] : memref<64x256xf32, #tpu.memory_space<vmem>>, vector<64x256xf32>
    %c0_2 = arith.constant 0 : index
    %c0_3 = arith.constant 0 : index
    %4 = vector.load %arg3[%c0_2, %c0_3] : memref<64x128xbf16, #tpu.memory_space<vmem>>, vector<64x128xbf16>
    %c0_4 = arith.constant 0 : index
    %c0_5 = arith.constant 0 : index
    %5 = vector.load %arg4[%c0_4, %c0_5] : memref<128x256xbf16, #tpu.memory_space<vmem>>, vector<128x256xbf16>
    %cst = arith.constant dense<0.000000e+00> : vector<64x256xf32>
    %6 = tpu.matmul %4, %5, %cst {dimension_numbers = #tpu.dot_dimension_numbers<[1], [0], [0], [1], [0, 0, 1, 1], [], []>} : vector<64x128xbf16>, vector<128x256xbf16>, vector<64x256xf32> -> vector<64x256xf32>
    %7 = arith.addf %3, %6 : vector<64x256xf32>
    %c0_6 = arith.constant 0 : index
    %c0_7 = arith.constant 0 : index
    %8 = vector.load %arg7[%c0_6, %c0_7] : memref<64x256xf32, #tpu.memory_space<vmem>>, vector<64x256xf32>
    tpu.vector_store %arg7[%c0_6, %c0_7], %7 {strides = array<i32>} : memref<64x256xf32, #tpu.memory_space<vmem>>, vector<64x256xf32>,
    %c0_i32_8 = arith.constant 0 : i32
    %9 = arith.cmpi eq, %arg2, %c0_i32_8 : i32
    %10 = arith.extui %9 : i1 to i32
    %c0_i32_9 = arith.constant 0 : i32
    %11 = arith.cmpi ne, %10, %c0_i32_9 : i32
    scf.if %11 {
      %c0_10 = arith.constant 0 : index
      %c0_11 = arith.constant 0 : index
      %12 = vector.load %arg7[%c0_10, %c0_11] : memref<64x256xf32, #tpu.memory_space<vmem>>, vector<64x256xf32>
      %c0_12 = arith.constant 0 : index
      %c0_13 = arith.constant 0 : index
      %13 = vector.load %arg5[%c0_12, %c0_13] : memref<1x256xf32, #tpu.memory_space<vmem>>, vector<1x256xf32>
      %14 = vector.broadcast %13 : vector<1x256xf32> to vector<64x256xf32>
      %15 = arith.addf %12, %14 : vector<64x256xf32>
      %cst_14 = arith.constant 0.000000e+00 : f32
      %16 = vector.broadcast %cst_14 : f32 to vector<64x256xf32>
      %17 = arith.maximumf %15, %16 : vector<64x256xf32>
      %c0_15 = arith.constant 0 : index
      %c0_16 = arith.constant 0 : index
      %18 = vector.load %arg6[%c0_15, %c0_16] : memref<64x256xf32, #tpu.memory_space<vmem>>, vector<64x256xf32>
      tpu.vector_store %arg6[%c0_15, %c0_16], %17 {strides = array<i32>} : memref<64x256xf32, #tpu.memory_space<vmem>>, vector<64x256xf32>,
    } else {
    }
    return
  }
  func.func @transform_0(%arg0: i32, %arg1: i32, %arg2: i32) -> (i32, i32) {
    %c0_i32 = arith.constant 0 : i32
    return %arg0, %arg2 : i32, i32
  }
  func.func @transform_1(%arg0: i32, %arg1: i32, %arg2: i32) -> (i32, i32) {
    %c0_i32 = arith.constant 0 : i32
    return %arg2, %arg1 : i32, i32
  }
  func.func @transform_2(%arg0: i32, %arg1: i32, %arg2: i32) -> (i32, i32) {
    %c0_i32 = arith.constant 0 : i32
    %c0_i32_0 = arith.constant 0 : i32
    return %c0_i32, %arg1 : i32, i32
  }
  func.func @transform_3(%arg0: i32, %arg1: i32, %arg2: i32) -> (i32, i32) {
    %c0_i32 = arith.constant 0 : i32
    return %arg0, %arg1 : i32, i32
  }
}

</mosaic_0001>

<bundles_post_ra>
// kernel: tpu_custom_call.1
= control target key start
LH: loop header
LB: loop body
LE: loop exit
PB: predicated region body
PF: predicated region fallthrough
CT: control target
= control target key end

     0   :  { %8 = vsyncpa [#allocation4], 0  ;;  %s625_s0 = inlined_call_operand.hbm [shape: bf16[64,128], index: 0, kind: input, shape index: {}]   ;;  %s626_s1 = inlined_call_operand.hbm [shape: bf16[128,256], index: 1, kind: input, shape index: {}]   ;;  %s627_s2 = inlined_call_operand.vmem [shape: f32[1,256], index: 2, kind: input, shape index: {}]   ;;  %s628_s3 = inlined_call_operand.hbm [shape: f32[64,256], index: 3, kind: output, shape index: {}]  }
   0x1   :  { %9 = vsyncpa [#allocation7], 0 }
   0x2   :  { %10 = vsyncpa [#allocation5], 0  ;;  %s556_s12 = smov [#allocation3]   ;;  %s484_s16 = scalar_lea.hbm %s625_s0, 512 }
   0x3   :  { %s16_s13 = sshll.u32 %s556_s12, 4  ;;  %p485_p0 = scmp.ne.s32.totalorder %s625_s0, %s484_s16  ;;  %s17_s13 = int_to_ptr.vmem [resolvable:$true] %s16_s13 }
   0x4   :  { %p488_p1 = scmp.lt.u32.totalorder %s484_s16, %s625_s0 }
   0x6   :  { %p490_p2 = pnand %p488_p1, %p485_p0 }
   0x8   :  { %493 = shalt.err (!%p490_p2)
}
   0x9   :  { %s494_s21 = scalar_lea.vmem %s17_s13, 512  ;;  %p499_p4 = scmp.lt.s32.totalorder %s17_s13, %s17_s13 }
   0xa   :  { %p495_p3 = scmp.ne.s32.totalorder %s17_s13, %s494_s21  ;;  %p500_p5 = scmp.lt.s32.totalorder %s494_s21, %s494_s21 }
   0xc   :  { %p501_p6 = por %p500_p5, %p499_p4 }
   0xe   :  { %p502_p7 = pnand %p501_p6, %p495_p3 }
  0x10   :  { %505 = shalt.err (!%p502_p7)
}
  0x11   :  { %s557_s22 = smov 64   ;;  %s558_s23 = smov 4  }
  0x12   :  { %22 = dma.hbm_to_vmem [thread:$0]  %s625_s0, 512, %s17_s13, [#allocation4], %s557_s22, %s557_s22, %s558_s23  }
  0x13   :  { %s559_s26 = smov [#allocation6]   ;;  %s506_s30 = scalar_lea.hbm %s626_s1, 2048 }
  0x14   :  { %s28_s27 = sshll.u32 %s559_s26, 4  ;;  %p507_p8 = scmp.ne.s32.totalorder %s626_s1, %s506_s30  ;;  %s29_s27 = int_to_ptr.vmem [resolvable:$true] %s28_s27 }
  0x15   :  { %p510_p9 = scmp.lt.u32.totalorder %s506_s30, %s626_s1 }
  0x17   :  { %p512_p10 = pnand %p510_p9, %p507_p8 }
  0x19   :  { %515 = shalt.err (!%p512_p10)
}
  0x1a   :  { %s516_s8 = scalar_lea.vmem %s29_s27, 2048  ;;  %p521_p12 = scmp.lt.s32.totalorder %s29_s27, %s29_s27 }
  0x1b   :  { %p517_p11 = scmp.ne.s32.totalorder %s29_s27, %s516_s8  ;;  %p522_p13 = scmp.lt.s32.totalorder %s516_s8, %s516_s8 }
  0x1d   :  { %p523_p0 = por %p522_p13, %p521_p12 }
  0x1f   :  { %p524_p1 = pnand %p523_p0, %p517_p11 }
  0x21   :  { %527 = shalt.err (!%p524_p1)
}
  0x22   :  { %s560_s0 = smov 128   ;;  %s561_s9 = smov 8  }
  0x23   :  { %34 = dma.hbm_to_vmem [thread:$0]  %s626_s1, 2048, %s29_s27, [#allocation7], %s560_s0, %s560_s0, %s561_s9  }
  0x24   :  { %550 = dma.done.wait [#allocation4], 512  }
  0x25   :  { %551 = vsyncadd [#allocation4], 4294966784 }
  0x26   :  { %552 = dma.done.wait [#allocation7], 2048  }
  0x27   :  { %553 = vsyncadd [#allocation7], 4294965248  ;;  %v562_v0 = vmov 0   ;;  %v456_v1 = vld [vmem:[#allocation6 + $0x4] ss:$8 sps:$4 sm:$0xff]   ;;  %v481_v18 = vld [vmem:[#allocation3 + $0x10] sm:$0xff]   ;;  %v334_v21 = vlaneseq }
  0x28   :  { %240 = vmatprep.mubr.bf16.mxu0 %v562_v0  ;;  %260 = vmatprep.mubr.bf16.mxu1 %v562_v0  ;;  %v458_v2 = vld [vmem:[#allocation6] ss:$8 sps:$4 sm:$0xff]   ;;  %v459_v3 = vld [vmem:[#allocation6 + $0x14] ss:$8 sps:$4 sm:$0xff]   ;;  %v461_v4 = vld [vmem:[#allocation6 + $0x10] ss:$8 sps:$4 sm:$0xff]  }
  0x29   :  { %208 = vmatprep.subr.bf16.mxu0 %v456_v1  ;;  %430 = vmatprep.subr.bf16.mxu1 %v456_v1  ;;  %v462_v5 = vld [vmem:[#allocation6 + $0x24] ss:$8 sps:$4 sm:$0xff]   ;;  %v464_v6 = vld [vmem:[#allocation6 + $0x20] ss:$8 sps:$4 sm:$0xff]   ;;  %v465_v7 = vld [vmem:[#allocation6 + $0x34] ss:$8 sps:$4 sm:$0xff]  }
  0x2a   :  { %209 = vmatpush1.bf16.msra.mxu0 %v458_v2  ;;  %438 = vmatpush1.bf16.msra.mxu1 %v458_v2  ;;  %v467_v8 = vld [vmem:[#allocation6 + $0x30] ss:$8 sps:$4 sm:$0xff]   ;;  %v468_v9 = vld [vmem:[#allocation6 + $0x44] ss:$8 sps:$4 sm:$0xff]   ;;  %v470_v10 = vld [vmem:[#allocation6 + $0x40] ss:$8 sps:$4 sm:$0xff]  }
  0x2b   :  { %210 = vmatprep.subr.bf16.mxu0 %v459_v3  ;;  %431 = vmatprep.subr.bf16.mxu1 %v459_v3  ;;  %v471_v11 = vld [vmem:[#allocation6 + $0x54] ss:$8 sps:$4 sm:$0xff]   ;;  %v473_v12 = vld [vmem:[#allocation6 + $0x50] ss:$8 sps:$4 sm:$0xff]   ;;  %v474_v13 = vld [vmem:[#allocation6 + $0x64] ss:$8 sps:$4 sm:$0xff]  }
  0x2c   :  { %v476_v14 = vld [vmem:[#allocation6 + $0x60] ss:$8 sps:$4 sm:$0xff]   ;;  %v477_v15 = vld [vmem:[#allocation6 + $0x74] ss:$8 sps:$4 sm:$0xff]   ;;  %v479_v16 = vld [vmem:[#allocation6 + $0x70] ss:$8 sps:$4 sm:$0xff]  }
  0x2d   :  { %v480_v17 = vld [vmem:[#allocation3] sm:$0xff]   ;;  %v482_v19 = vld [vmem:[#allocation3 + $0x8] sm:$0xff]   ;;  %v483_v20 = vld [vmem:[#allocation3 + $0x18] sm:$0xff]   ;;  %v335_v22 = vshrl.u32 %v334_v21, 7 }
  0x2e   :  { %211 = vmatpush1.bf16.msra.mxu0 %v461_v4  ;;  %439 = vmatpush1.bf16.msra.mxu1 %v461_v4  ;;  %v332_v24 = vld [vmem:[%s627_s2] sm:$0x3]  ;;  %s563_s2 = smov [#allocation8]  }
  0x2f   :  { %212 = vmatprep.subr.bf16.mxu0 %v462_v5  ;;  %432 = vmatprep.subr.bf16.mxu1 %v462_v5  ;;  %v336_v23 = vsub.s32 0, %v335_v22  ;;  %v340_v25 = vsub.s32 1, %v335_v22  ;;  %s397_s13 = sshll.u32 %s563_s2, 4  ;;  %s398_s13 = int_to_ptr.vmem [resolvable:$true] %s397_s13 }
  0x30   :  { %s528_s14 = scalar_lea.vmem %s398_s13, 2048  ;;  %p533_p3 = scmp.lt.s32.totalorder %s398_s13, %s398_s13 }
  0x31   :  { %v337_v26 = vrot.slane %v332_v24, %v336_v23  ;;  %v341_v27 = vrot.slane %v332_v24, %v340_v25  ;;  %p529_p2 = scmp.ne.s32.totalorder %s398_s13, %s528_s14  ;;  %p534_p4 = scmp.lt.s32.totalorder %s528_s14, %s528_s14 }
  0x32   :  { %213 = vmatpush1.bf16.msra.mxu0 %v464_v6  ;;  %440 = vmatpush1.bf16.msra.mxu1 %v464_v6 }
  0x33   :  { %214 = vmatprep.subr.bf16.mxu0 %v465_v7  ;;  %433 = vmatprep.subr.bf16.mxu1 %v465_v7  ;;  %p535_p5 = por %p534_p4, %p533_p3 }
  0x35   :  { %p536_p6 = pnand %p535_p5, %p529_p2 }
  0x36   :  { %215 = vmatpush1.bf16.msra.mxu0 %v467_v8  ;;  %441 = vmatpush1.bf16.msra.mxu1 %v467_v8 }
  0x37   :  { %216 = vmatprep.subr.bf16.mxu0 %v468_v9  ;;  %434 = vmatprep.subr.bf16.mxu1 %v468_v9 }
  0x3a   :  { %217 = vmatpush1.bf16.msra.mxu0 %v470_v10  ;;  %442 = vmatpush1.bf16.msra.mxu1 %v470_v10 }
  0x3b   :  { %218 = vmatprep.subr.bf16.mxu0 %v471_v11  ;;  %435 = vmatprep.subr.bf16.mxu1 %v471_v11 }
  0x3e   :  { %219 = vmatpush1.bf16.msra.mxu0 %v473_v12  ;;  %443 = vmatpush1.bf16.msra.mxu1 %v473_v12 }
  0x3f   :  { %220 = vmatprep.subr.bf16.mxu0 %v474_v13  ;;  %436 = vmatprep.subr.bf16.mxu1 %v474_v13 }
  0x42   :  { %221 = vmatpush1.bf16.msra.mxu0 %v476_v14  ;;  %444 = vmatpush1.bf16.msra.mxu1 %v476_v14 }
  0x43   :  { %222 = vmatprep.subr.bf16.mxu0 %v477_v15  ;;  %437 = vmatprep.subr.bf16.mxu1 %v477_v15 }
  0x46   :  { %223 = vmatpush1.bf16.msra.mxu0 %v479_v16  ;;  %445 = vmatpush1.bf16.msra.mxu1 %v479_v16 }
  0x49   :  { %241 = vmatmul.mubr.bf16.vlgmr.msra.gmra.mrb[0].mxu0 %v480_v17  ;;  %261 = vmatmul.mubr.bf16.vlgmr.msra.gmra.mrb[0].mxu1 %v481_v18 }
  0x4a   :  { %250 = vmatprep.mubr.bf16.mxu0 %v562_v0  ;;  %270 = vmatprep.mubr.bf16.mxu1 %v562_v0 }
  0x51   :  { %251 = vmatmul.mubr.bf16.gmra.mrb[4].mxu0 %v482_v19  ;;  %271 = vmatmul.mubr.bf16.gmra.mrb[4].mxu1 %v483_v20 }
 0x11c   :  { %v242_v28 = vpop.f32.mrb[0].mxu0  ;;  %v262_v29 = vpop.f32.mrb[0].mxu1 }
 0x11d   :  { %v344_v30 = vadd.f32 %v337_v26, %v242_v28  ;;  %v352_v31 = vadd.f32 %v337_v26, %v262_v29  ;;  %v244_v32 = vpop.f32.mrb[1].mxu0  ;;  %v264_v33 = vpop.f32.mrb[1].mxu1 }
 0x11e   :  { %v345_v34 = vadd.f32 %v341_v27, %v244_v32  ;;  %v353_v35 = vadd.f32 %v341_v27, %v264_v33  ;;  %v246_v36 = vpop.f32.mrb[2].mxu0  ;;  %v266_v37 = vpop.f32.mrb[2].mxu1 }
 0x11f   :  { %v360_v38 = vmax.f32 %v344_v30, 0.0  ;;  %v368_v39 = vmax.f32 %v352_v31, 0.0  ;;  %v346_v40 = vadd.f32 %v337_v26, %v246_v36  ;;  %v354_v41 = vadd.f32 %v337_v26, %v266_v37  ;;  %v248_v42 = vpop.f32.mrb[3].mxu0  ;;  %v268_v43 = vpop.f32.mrb[3].mxu1 }
 0x120   :  { %v361_v44 = vmax.f32 %v345_v34, 0.0  ;;  %v369_v45 = vmax.f32 %v353_v35, 0.0  ;;  %v347_v46 = vadd.f32 %v341_v27, %v248_v42  ;;  %v355_v47 = vadd.f32 %v341_v27, %v268_v43 }
 0x121   :  { %376 = vst [vmem:[#allocation8] sm:$0xff] %v360_v38  ;;  %384 = vst [vmem:[#allocation8 + $0x40] sm:$0xff] %v368_v39  ;;  %v362_v48 = vmax.f32 %v346_v40, 0.0  ;;  %v370_v49 = vmax.f32 %v354_v41, 0.0 }
 0x122   :  { %377 = vst [vmem:[#allocation8 + $0x8] sm:$0xff] %v361_v44  ;;  %385 = vst [vmem:[#allocation8 + $0x48] sm:$0xff] %v369_v45  ;;  %v363_v50 = vmax.f32 %v347_v46, 0.0  ;;  %v371_v51 = vmax.f32 %v355_v47, 0.0 }
 0x123   :  { %378 = vst [vmem:[#allocation8 + $0x10] sm:$0xff] %v362_v48  ;;  %386 = vst [vmem:[#allocation8 + $0x50] sm:$0xff] %v370_v49 }
 0x124   :  { %379 = vst [vmem:[#allocation8 + $0x18] sm:$0xff] %v363_v50  ;;  %387 = vst [vmem:[#allocation8 + $0x58] sm:$0xff] %v371_v51  ;;  %v252_v52 = vpop.f32.mrb[4].mxu0  ;;  %v272_v53 = vpop.f32.mrb[4].mxu1 }
 0x125   :  { %v348_v54 = vadd.f32 %v337_v26, %v252_v52  ;;  %v356_v55 = vadd.f32 %v337_v26, %v272_v53  ;;  %v254_v56 = vpop.f32.mrb[5].mxu0  ;;  %v274_v57 = vpop.f32.mrb[5].mxu1 }
 0x126   :  { %v349_v58 = vadd.f32 %v341_v27, %v254_v56  ;;  %v357_v59 = vadd.f32 %v341_v27, %v274_v57  ;;  %v256_v60 = vpop.f32.mrb[6].mxu0  ;;  %v276_v61 = vpop.f32.mrb[6].mxu1 }
 0x127   :  { %v364_v62 = vmax.f32 %v348_v54, 0.0  ;;  %v372_v63 = vmax.f32 %v356_v55, 0.0  ;;  %v350_v0 = vadd.f32 %v337_v26, %v256_v60  ;;  %v358_v1 = vadd.f32 %v337_v26, %v276_v61  ;;  %v258_v2 = vpop.f32.mrb[7].mxu0  ;;  %v278_v3 = vpop.f32.mrb[7].mxu1 }
 0x128   :  { %v365_v4 = vmax.f32 %v349_v58, 0.0  ;;  %v373_v5 = vmax.f32 %v357_v59, 0.0  ;;  %v351_v6 = vadd.f32 %v341_v27, %v258_v2  ;;  %v359_v7 = vadd.f32 %v341_v27, %v278_v3 }
 0x129   :  { %380 = vst [vmem:[#allocation8 + $0x20] sm:$0xff] %v364_v62  ;;  %388 = vst [vmem:[#allocation8 + $0x60] sm:$0xff] %v372_v63  ;;  %v366_v8 = vmax.f32 %v350_v0, 0.0  ;;  %v374_v9 = vmax.f32 %v358_v1, 0.0 }
 0x12a   :  { %381 = vst [vmem:[#allocation8 + $0x28] sm:$0xff] %v365_v4  ;;  %389 = vst [vmem:[#allocation8 + $0x68] sm:$0xff] %v373_v5  ;;  %v367_v10 = vmax.f32 %v351_v6, 0.0  ;;  %v375_v11 = vmax.f32 %v359_v7, 0.0 }
 0x12b   :  { %382 = vst [vmem:[#allocation8 + $0x30] sm:$0xff] %v366_v8  ;;  %390 = vst [vmem:[#allocation8 + $0x70] sm:$0xff] %v374_v9 }
 0x12c   :  { %383 = vst [vmem:[#allocation8 + $0x38] sm:$0xff] %v367_v10  ;;  %391 = vst [vmem:[#allocation8 + $0x78] sm:$0xff] %v375_v11 }
 0x12d   :  { %539 = shalt.err (!%p536_p6)
}
 0x12e   :  { %s540_s17 = scalar_lea.hbm %s628_s3, 2048 }
 0x12f   :  { %p541_p7 = scmp.ne.s32.totalorder %s628_s3, %s540_s17  ;;  %p544_p8 = scmp.lt.u32.totalorder %s540_s17, %s628_s3 }
 0x131   :  { %p546_p9 = pnand %p544_p8, %p541_p7 }
 0x133   :  { %549 = shalt.err (!%p546_p9)
}
 0x134   :  { %s564_s22 = smov 256   ;;  %s565_s23 = smov 16  }
 0x135   :  { %403 = dma.vmem_to_hbm [thread:$0]  %s398_s13, 2048, %s628_s3, [#allocation5], %s564_s22, %s564_s22, %s565_s23  }
 0x136   :  { %554 = dma.done.wait [#allocation5], 2048  }
 0x137   :  { %555 = vsyncadd [#allocation5], 4294965248 }
 0x138   :  { %407 = vsyncpa [#allocation4], 1 }
 0x139   :  { %408 = vsyncpa [#allocation7], 1 }
 0x13a   :  { %409 = vsyncpa [#allocation5], 1 }

</bundles_post_ra>
